<compile_context>
chip_gen: v7x
topology: tpu7x:2x2x1
jax: 0.10.0
libtpu: 0.0.40
codegen_flags: <defaults>
</compile_context>

<pallas_src>
import functools
import math

import jax
import jax.numpy as jnp
from jax.experimental import pallas as pl
from jax.experimental.pallas import tpu as pltpu


def _embed_kernel(x_ref, dv_ref, o_ref):
    """o = sin(x_aug @ div_aug).

    x_ref:  (TILE, KP)  folded input values; column k holds 1.0 (carries the +pi/2
                        cos offset through the contraction); columns > k are zero.
    dv_ref: (KP, W)     rows j < k: div_term tiled over lanes, zeroed outside lane
                        group j;  row k: pi/2 on cos lanes, 0 on sin lanes;
                        rows > k: zeros.  Constant index_map -> VMEM resident.
    o_ref:  (TILE, W)   row-major identical to k consecutive (d_model,) output rows.
    """
    phase = jnp.dot(x_ref[...], dv_ref[...], preferred_element_type=jnp.float32)
    o_ref[...] = jnp.sin(phase).astype(o_ref.dtype)


def _round_up(v, m):
    return ((v + m - 1) // m) * m


def _choose_tile(n_rows, w_lanes, max_tile_rows, block_bytes=2 << 20):
    """Pick (tile_rows, num_blocks) for a (n_rows, w_lanes) f32 output.

    - output block bounded to ~block_bytes (large tiles amortize per-step overhead)
    - >= 2 grid steps whenever rows allow (v7x has 2 TensorCores), up to 8
    - tile ~= n_rows / num_blocks so tail padding is bounded by one tile
    - tile kept a multiple of 16 (valid sublane tiling for both f32 and bf16 out)
    """
    cap = max(16, min(max_tile_rows, (block_bytes // (4 * w_lanes)) // 16 * 16))
    nb = max(2, min(8, -(-n_rows // 128)))      # prefer >=128-row tiles, 2..8 blocks
    nb = max(nb, -(-n_rows // cap))             # but never exceed the per-block cap
    tile = min(cap, max(16, _round_up(-(-n_rows // nb), 16)))
    nb = -(-n_rows // tile)
    return tile, nb


@functools.partial(jax.jit, static_argnames=("d_model", "out_dtype", "tile_rows"))
def learn_embedding(x, factor, d_model, out_dtype=jnp.float32, tile_rows=4096):
    """Pallas implementation of learnEmbedding.forward.

    x:       float array, 2D (B, T) or 3D (B, V, Z)
    factor:  scalar parameter (shape (1,) or ())
    """
    if d_model % 2 != 0:
        raise ValueError("d_model must be even (PyTorch source assumes this).")
    half = d_model // 2

    x = x.astype(jnp.float32)
    lead_shape = x.shape
    n = math.prod(lead_shape)

    # Parameter glue (matches torch: exp(arange(0, d_model, 2) * factor)).
    factor_s = jnp.reshape(factor, ()).astype(jnp.float32)
    div_term = jnp.exp(jnp.arange(0, d_model, 2, dtype=jnp.float32) * factor_s)  # (half,)

    # Lane-dense layout: W lanes hold k = W // d_model consecutive output rows.
    w_lanes = math.lcm(d_model, 128)
    if w_lanes <= 2048:
        k = w_lanes // d_model
    else:
        # TODO(synk): pathological d_model (lcm with 128 too large) falls back to an
        # unfolded layout; stores may be lane-masked on this rare path.
        k, w_lanes = 1, d_model

    # ---- constant (k+1, W) frequency/offset matrix (VMEM-resident across grid) ----
    lane = jnp.arange(w_lanes)
    group = lane // d_model                          # which folded row owns this lane
    col = lane % d_model                             # column inside the d_model block
    div_row = jnp.tile(jnp.concatenate([div_term, div_term]), k)                 # (W,)
    div_masked = jnp.where(group[None, :] == jnp.arange(k)[:, None],
                           div_row[None, :], 0.0)                                # (k, W)
    offs_row = jnp.where(col >= half, jnp.float32(jnp.pi / 2), 0.0)[None, :]     # (1, W)
    kpad = _round_up(k + 1, 8)                       # sublane-align the contraction dim
    div_aug = jnp.concatenate(
        [div_masked, offs_row, jnp.zeros((kpad - k - 1, w_lanes), jnp.float32)],
        axis=0).astype(jnp.float32)                                              # (KP, W)

    # ---- fold / pad the input: (n,) -> (n_fold_pad, KP) with a trailing 1.0 column ----
    n_fold = -(-n // k)
    tile, nb = _choose_tile(n_fold, w_lanes, tile_rows)
    n_fold_pad = nb * tile
    total = n_fold_pad * k

    x_flat = x.reshape(n)
    if total != n:
        x_flat = jnp.pad(x_flat, (0, total - n))
    x2 = x_flat.reshape(n_fold_pad, k)
    x_aug = jnp.concatenate(
        [x2,
         jnp.ones((n_fold_pad, 1), jnp.float32),
         jnp.zeros((n_fold_pad, kpad - k - 1), jnp.float32)], axis=1)            # (rows, KP)

    out = pl.pallas_call(
        _embed_kernel,
        out_shape=jax.ShapeDtypeStruct((n_fold_pad, w_lanes), out_dtype),
        grid_spec=pltpu.PrefetchScalarGridSpec(
            num_scalar_prefetch=0,
            grid=(nb,),
            in_specs=[
                pl.BlockSpec((tile, kpad), lambda i: (i, 0)),
                pl.BlockSpec((kpad, w_lanes), lambda i: (0, 0)),   # constant block
            ],
            out_specs=pl.BlockSpec((tile, w_lanes), lambda i: (i, 0)),
        ),
        compiler_params=pltpu.CompilerParams(
            dimension_semantics=("parallel",)),
    )(x_aug, div_aug)

    # (n_fold_pad, W) is bit-identical row-major to (n_fold_pad*k, d_model).
    out = out.reshape(n_fold_pad * k, d_model)[:n]
    return out.reshape(*lead_shape, d_model)


def _reference(x, factor, d_model):
    x = x.astype(jnp.float32)
    div_term = jnp.exp(jnp.arange(0, d_model, 2, dtype=jnp.float32)
                       * jnp.reshape(factor, ()).astype(jnp.float32))
    phase = x[..., None] * div_term                   # (..., d_model//2)
    return jnp.concatenate([jnp.sin(phase), jnp.cos(phase)], axis=-1)


if __name__ == "__main__":
    key = jax.random.PRNGKey(0)
    k_factor, k_x2, k_x3, k_x4 = jax.random.split(key, 4)

    # Learnable scalar (nn.Parameter(torch.randn(1))), scaled so exp(arange*factor)
    # keeps phases in the positional-encoding range where f32 sin/cos is meaningful
    # (large |factor| makes the phases huge and the comparison ill-conditioned for
    # any implementation).
    factor = jax.random.normal(k_factor, (1,), dtype=jnp.float32) * 0.002

    d_model = 32
    TOL = dict(atol=1e-4, rtol=1e-4)   # MXU f32 phase is ~f32-accurate, not bit-exact

    # 2D input branch: x of shape (B, T)
    x2d = jax.random.normal(k_x2, (2, 8), dtype=jnp.float32)
    out2d = jax.block_until_ready(learn_embedding(x2d, factor, d_model))
    ref2d = _reference(x2d, factor, d_model)
    assert out2d.shape == (2, 8, d_model)
    assert jnp.allclose(out2d, ref2d, **TOL)

    # 3D input branch, sized to exercise a multi-block parallel grid + tail padding.
    x3d = jax.random.normal(k_x3, (2, 4, 40), dtype=jnp.float32)
    out3d = jax.block_until_ready(learn_embedding(x3d, factor, d_model))
    ref3d = _reference(x3d, factor, d_model)
    assert out3d.shape == (2, 4, 40, d_model)
    assert jnp.allclose(out3d, ref3d, **TOL)

    # Ragged row count (exercises fold/tile padding paths).
    x2r = jax.random.normal(k_x4, (2, 31), dtype=jnp.float32)
    out2r = jax.block_until_ready(learn_embedding(x2r, factor, d_model))
    ref2r = _reference(x2r, factor, d_model)
    assert out2r.shape == (2, 31, d_model)
    assert jnp.allclose(out2r, ref2r, **TOL)

    # d_model=64 (k=2, W=128) and d_model=192 (lcm path: k=2, W=384).
    for dm in (64, 192):
        o = jax.block_until_ready(learn_embedding(x2d, factor, dm))
        r = _reference(x2d, factor, dm)
        assert o.shape == (2, 8, dm)
        assert jnp.allclose(o, r, **TOL)

    # Optional bf16 output (halves HBM write traffic; relevant for v5e).
    ob = jax.block_until_ready(
        learn_embedding(x2d, factor, d_model, out_dtype=jnp.bfloat16))
    assert ob.dtype == jnp.bfloat16
    assert jnp.allclose(ob.astype(jnp.float32), ref2d, atol=1e-2, rtol=1e-2)

    print("KERNEL_OK")
</pallas_src>

<mosaic_0001>
module attributes {stable_mosaic.version = 11 : i64} {
  func.func @_embed_kernel(%arg0: i32, %arg1: memref<16x8xf32, #tpu.memory_space<vmem>>, %arg2: memref<8x128xf32, #tpu.memory_space<vmem>>, %arg3: memref<16x128xf32, #tpu.memory_space<vmem>>) attributes {dimension_semantics = [#tpu.dimension_semantics<parallel>], iteration_bounds = array<i64: 1>, scalar_prefetch = 0 : i64, scratch_operands = 0 : i64, tpu.core_type = #tpu.core_type<tc>, window_params = [{transform_indices = @transform_0, window_bounds = array<i64: 16, 8>}, {pipeline_mode = #tpu.pipeline_mode<synchronous>, transform_indices = @transform_1, window_bounds = array<i64: 8, 128>}, {transform_indices = @transform_2, window_bounds = array<i64: 16, 128>}]} {
    %c0 = arith.constant 0 : index
    %c0_0 = arith.constant 0 : index
    %0 = vector.load %arg1[%c0, %c0_0] : memref<16x8xf32, #tpu.memory_space<vmem>>, vector<16x8xf32>
    %c0_1 = arith.constant 0 : index
    %c0_2 = arith.constant 0 : index
    %1 = vector.load %arg2[%c0_1, %c0_2] : memref<8x128xf32, #tpu.memory_space<vmem>>, vector<8x128xf32>
    %cst = arith.constant dense<0.000000e+00> : vector<16x128xf32>
    %2 = tpu.matmul %0, %1, %cst {dimension_numbers = #tpu.dot_dimension_numbers<[1], [0], [0], [1], [0, 0, 1, 1], [], []>} : vector<16x8xf32>, vector<8x128xf32>, vector<16x128xf32> -> vector<16x128xf32>
    %3 = math.sin %2 : vector<16x128xf32>
    %c0_3 = arith.constant 0 : index
    %c0_4 = arith.constant 0 : index
    %4 = vector.load %arg3[%c0_3, %c0_4] : memref<16x128xf32, #tpu.memory_space<vmem>>, vector<16x128xf32>
    tpu.vector_store %arg3[%c0_3, %c0_4], %3 {strides = array<i32>} : memref<16x128xf32, #tpu.memory_space<vmem>>, vector<16x128xf32>,
    return
  }
  func.func @transform_0(%arg0: i32) -> (i32, i32) {
    %c0_i32 = arith.constant 0 : i32
    %c0_i32_0 = arith.constant 0 : i32
    return %arg0, %c0_i32 : i32, i32
  }
  func.func @transform_1(%arg0: i32) -> (i32, i32) {
    %c0_i32 = arith.constant 0 : i32
    %c0_i32_0 = arith.constant 0 : i32
    %c0_i32_1 = arith.constant 0 : i32
    return %c0_i32, %c0_i32_0 : i32, i32
  }
  func.func @transform_2(%arg0: i32) -> (i32, i32) {
    %c0_i32 = arith.constant 0 : i32
    %c0_i32_0 = arith.constant 0 : i32
    return %arg0, %c0_i32 : i32, i32
  }
}

</mosaic_0001>

<bundles_post_ra>
// kernel: tile.8
= control target key start
LH: loop header
LB: loop body
LE: loop exit
PB: predicated region body
PF: predicated region fallthrough
CT: control target
= control target key end

     0   :  { %s22_s0 = inlined_call_operand.vmem [shape: f32[32], index: 0, kind: input, shape index: {}]   ;;  %s23_s1 = inlined_call_operand.vmem [shape: f32[4,32], index: 1, kind: output, shape index: {}]  }
   0x1   :  { %v4_v0 = vld [vmem:[%s22_s0] ss:$0 sm:$0xff] }
   0x2   :  { %5 = vst [vmem:[%s23_s1] sm:$0xf] %v4_v0 }

// kernel: learn_embedding.1
= control target key start
LH: loop header
LB: loop body
LE: loop exit
PB: predicated region body
PF: predicated region fallthrough
CT: control target
= control target key end

     0   :  { %vm14_vm0 = vcmask 64512   ;;  %v350_v25 = vmov 683565275   ;;  %v351_v29 = vmov 2475754826   ;;  %s448_s1 = inlined_call_operand.vmem [shape: f32[8,128], index: 1, kind: input, shape index: {}]   ;;  %s449_s0 = inlined_call_operand.vmem [shape: f32[16,8], index: 0, kind: input, shape index: {}]   ;;  %s450_s2 = inlined_call_operand.vmem [shape: f32[16,128], index: 2, kind: output, shape index: {}]  }
   0x1   :  { %v13_v0 = vld [vmem:[%s448_s1] sm:$0xff]  ;;  %v12_v2 = vld [vmem:[%s449_s0 + $0x8] sm:$0xff]  ;;  %v352_v31 = vmov 2131351028   ;;  %v353_v33 = vmov 2102212464  }
   0x2   :  { %v11_v1 = vld [vmem:[%s449_s0] sm:$0xff]  ;;  %323 = vmatprep.subr.mxu0 %v13_v0  ;;  %v354_v35 = vmov 920167782   ;;  %v355_v42 = vmov 1326507024  }
   0x3   :  { %325 = vmatprep.mubr.msk.f32.mxu0 %vm14_vm0, %v11_v1  ;;  %324 = vmatpush3.msra.mxu0 %v13_v0 }
   0x4   :  { %326 = vmatmul.mubr.msk.f32.vlgmr.msra.gmra.mrb[0].mxu0 %vm14_vm0, %v12_v2 }
  0xd7   :  { %v380_v3 = vpop.f32.mrb[0].mxu0 }
  0xd8   :  { %v200_v4 = vand.u32 2147483647, %v380_v3  ;;  %v203_v5 = vand.u32 2139095040, %v380_v3  ;;  %v384_v6 = vpop.f32.mrb[1].mxu0  ;;  %vm202_vm15 = vcmp.lt.s32.totalorder %v380_v3, 0 }
  0xd9   :  { %v99_v7 = vand.u32 2139095040, %v384_v6  ;;  %v96_v10 = vand.u32 2147483647, %v384_v6 }
  0xda   :  { %v204_v8 = vshrl.u32 %v203_v5, 23  ;;  %v207_v9 = vand.u32 8388607, %v200_v4  ;;  %vm201_vm0 = vcmp.le.f32.partialorder %v200_v4, 0.7853982 }
  0xdb   :  { %v100_v11 = vshrl.u32 %v99_v7, 23  ;;  %v392_v16 = vand.u32 8388607, %v96_v10 }
  0xdc   :  { %v316_v12 = vadd.s32 4294967169, %v204_v8  ;;  %v208_v15 = vor.u32 8388608, %v207_v9 }
  0xdd   :  { %v312_v13 = vadd.s32 4294967169, %v100_v11  ;;  %v104_v23 = vor.u32 8388608, %v392_v16 }
  0xde   :  { %v210_v14 = vadd.s32 1, %v316_v12  ;;  %v394_v22 = vshll.u32 %v208_v15, 8 }
  0xdf   :  { %v106_v17 = vadd.s32 1, %v312_v13 }
  0xe0   :  { %vm211_vm1 = vcmp.gt.s32.totalorder %v210_v14, 0 }
  0xe1   :  { %v212_v18 = vsel %vm211_vm1, %v210_v14, 0  ;;  %vm107_vm2 = vcmp.gt.s32.totalorder %v106_v17, 0  ;;  %vm98_vm1 = vcmp.lt.s32.totalorder %v384_v6, 0 }
  0xe2   :  { %v213_v19 = vshrl.u32 %v212_v18, 5  ;;  %v214_v20 = vand.u32 31, %v212_v18  ;;  %v108_v21 = vsel %vm107_vm2, %v106_v17, 0  ;;  %v144_v17 = vshll.u32 %v104_v23, 8 }
  0xe3   :  { %v397_v27 = vshrl.u32 %v108_v21, 5  ;;  %v110_v28 = vand.u32 31, %v108_v21  ;;  %vm97_vm2 = vcmp.le.f32.partialorder %v96_v10, 0.7853982 }
  0xe4   :  { %v215_v24 = vsub.s32 32, %v214_v20  ;;  %v217_v26 = vshll.u32 %v350_v25, %v214_v20  ;;  %v220_v30 = vshll.u32 %v351_v29, %v214_v20  ;;  %v223_v32 = vshll.u32 %v352_v31, %v214_v20 }
  0xe5   :  { %v226_v34 = vshll.u32 %v353_v33, %v214_v20  ;;  %v229_v36 = vshll.u32 %v354_v35, %v214_v20  ;;  %vm232_vm3 = vcmp.lt.s32.totalorder %v213_v19, 1  ;;  %vm233_vm4 = vcmp.lt.s32.totalorder %v213_v19, 2 }
  0xe6   :  { %v218_v37 = vshrl.u32 %v351_v29, %v215_v24  ;;  %v221_v38 = vshrl.u32 %v352_v31, %v215_v24  ;;  %v224_v39 = vshrl.u32 %v353_v33, %v215_v24  ;;  %v216_v40 = vshrl.u32 %v350_v25, %v215_v24 }
  0xe7   :  { %v227_v41 = vshrl.u32 %v354_v35, %v215_v24  ;;  %v230_v43 = vshrl.u32 %v355_v42, %v215_v24  ;;  %v111_v47 = vsub.s32 32, %v110_v28  ;;  %vm234_vm5 = vcmp.lt.s32.totalorder %v213_v19, 3 }
  0xe8   :  { %v219_v44 = vor.u32 %v218_v37, %v217_v26  ;;  %v222_v45 = vor.u32 %v221_v38, %v220_v30  ;;  %v225_v46 = vor.u32 %v224_v39, %v223_v32  ;;  %vm235_vm6 = vcmp.lt.s32.totalorder %v213_v19, 4 }
  0xe9   :  { %v228_v48 = vor.u32 %v227_v41, %v226_v34  ;;  %v231_v49 = vor.u32 %v230_v43, %v229_v36  ;;  %v113_v57 = vshll.u32 %v350_v25, %v110_v28  ;;  %v114_v60 = vshrl.u32 %v351_v29, %v111_v47 }
  0xea   :  { %v236_v50 = vsel %vm232_vm3, %v216_v40, %v219_v44  ;;  %v237_v51 = vsel %vm235_vm6, %v225_v46, 2102212464  ;;  %v240_v52 = vsel %vm232_vm3, %v219_v44, %v222_v45  ;;  %v244_v53 = vsel %vm232_vm3, %v222_v45, %v225_v46 }
  0xeb   :  { %v238_v54 = vsel %vm234_vm5, %v222_v45, %v237_v51  ;;  %v241_v55 = vsel %vm235_vm6, %v228_v48, 920167782  ;;  %v245_v56 = vsel %vm235_vm6, %v231_v49, 1326507024  ;;  %v116_v61 = vshll.u32 %v351_v29, %v110_v28 }
  0xec   :  { %v242_v58 = vsel %vm234_vm5, %v225_v46, %v241_v55  ;;  %v246_v59 = vsel %vm234_vm5, %v228_v48, %v245_v56  ;;  %v239_v62 = vsel %vm233_vm4, %v236_v50, %v238_v54  ;;  %v117_v1 = vshrl.u32 %v352_v31, %v111_v47 }
  0xed   :  { %v243_v63 = vsel %vm233_vm4, %v240_v52, %v242_v58  ;;  %v247_v0 = vsel %vm233_vm4, %v244_v53, %v246_v59  ;;  %v115_v9 = vor.u32 %v114_v60, %v113_v57  ;;  %v119_v12 = vshll.u32 %v352_v31, %v110_v28 }
  0xee   :  { %v406_v2 = vmul.u32.u64.low %v394_v22, %v247_v0  ;;  %v407_v5 = vmul.u32.u64.high %v394_v22, %v247_v0, %v406_v2  ;;  %v410_v7 = vmul.u32.u64.low %v394_v22, %v243_v63  ;;  %v411_v8 = vmul.u32.u64.high %v394_v22, %v243_v63, %v410_v7 }
  0xef   :  { %v118_v11 = vor.u32 %v117_v1, %v116_v61  ;;  %v120_v13 = vshrl.u32 %v353_v33, %v111_v47  ;;  %v122_v14 = vshll.u32 %v353_v33, %v110_v28  ;;  %v123_v15 = vshrl.u32 %v354_v35, %v111_v47 }
  0xf0   :  { %v126_v16 = vshrl.u32 %v355_v42, %v111_v47  ;;  %v255_v18 = vmul.u32 %v394_v22, %v239_v62  ;;  %v112_v19 = vshrl.u32 %v350_v25, %v111_v47  ;;  %v125_v21 = vshll.u32 %v354_v35, %v110_v28 }
  0xf1   :  { %v121_v20 = vor.u32 %v120_v13, %v119_v12  ;;  %vm257_vm7 = vc.u32 %v407_v5, %v410_v7  ;;  %v258_v24 = vadd.s32 1, %v411_v8  ;;  %v124_v26 = vor.u32 %v123_v15, %v122_v14 }
  0xf2   :  { %vm128_vm8 = vcmp.lt.s32.totalorder %v397_v27, 1  ;;  %v127_v29 = vor.u32 %v126_v16, %v125_v21  ;;  %vm130_vm9 = vcmp.lt.s32.totalorder %v397_v27, 3  ;;  %vm131_vm10 = vcmp.lt.s32.totalorder %v397_v27, 4 }
  0xf3   :  { %v136_v30 = vsel %vm128_vm8, %v115_v9, %v118_v11  ;;  %v259_v23 = vsel %vm257_vm7, %v258_v24, %v411_v8  ;;  %v133_v31 = vsel %vm131_vm10, %v121_v20, 2102212464  ;;  %v137_v22 = vsel %vm131_vm10, %v124_v26, 920167782 }
  0xf4   :  { %v140_v25 = vsel %vm128_vm8, %v118_v11, %v121_v20  ;;  %v260_v32 = vadd.s32 %v259_v23, %v255_v18  ;;  %vm129_vm11 = vcmp.lt.s32.totalorder %v397_v27, 2  ;;  %v138_v28 = vsel %vm130_vm9, %v121_v20, %v137_v22 }
  0xf5   :  { %v141_v33 = vsel %vm131_vm10, %v127_v29, 1326507024  ;;  %v132_v34 = vsel %vm128_vm8, %v112_v19, %v115_v9  ;;  %v134_v35 = vsel %vm130_vm9, %v118_v11, %v133_v31  ;;  %v139_v36 = vsel %vm129_vm11, %v136_v30, %v138_v28 }
  0xf6   :  { %v142_v37 = vsel %vm130_vm9, %v124_v26, %v141_v33  ;;  %v261_v38 = vadd.s32 536870912, %v260_v32  ;;  %v421_v40 = vmul.u32.u64.low %v144_v17, %v139_v36  ;;  %v422_v41 = vmul.u32.u64.high %v144_v17, %v139_v36, %v421_v40 }
  0xf7   :  { %v143_v39 = vsel %vm129_vm11, %v140_v25, %v142_v37  ;;  %v135_v45 = vsel %vm129_vm11, %v132_v34, %v134_v35  ;;  %v256_v61 = vadd.s32 %v410_v7, %v407_v5  ;;  %vm292_vm6 = vweird.f32 %v380_v3 }
  0xf8   :  { %v424_v42 = vmul.u32.u64.low %v144_v17, %v143_v39  ;;  %v425_v43 = vmul.u32.u64.high %v144_v17, %v143_v39, %v424_v42  ;;  %v262_v44 = vshrl.u32 %v261_v38, 30  ;;  %v154_v47 = vadd.s32 1, %v422_v41 }
  0xf9   :  { %v151_v27 = vmul.u32 %v144_v17, %v135_v45  ;;  %vm188_vm10 = vweird.f32 %v384_v6 }
  0xfa   :  { %v263_v46 = vshll.u32 %v262_v44, 30  ;;  %vm153_vm12 = vc.u32 %v425_v43, %v421_v40  ;;  %v152_v18 = vadd.s32 %v421_v40, %v425_v43  ;;  %v286_v7 = vsub.s32 4, %v262_v44 }
  0xfb   :  { %v155_v49 = vsel %vm153_vm12, %v154_v47, %v422_v41 }
  0xfc   :  { %v264_v48 = vsub.s32 %v260_v32, %v263_v46  ;;  %v156_v50 = vadd.s32 %v155_v49, %v151_v27  ;;  %v287_v22 = vsel %vm202_vm15, %v286_v7, %v262_v44 }
  0xfd   :  { %v289_v28 = vsel %vm201_vm0, 0, %v287_v22 }
  0xfe   :  { %v266_v51 = vsub.s32 0, %v264_v48  ;;  %v157_v52 = vadd.s32 536870912, %v156_v50  ;;  %v293_v37 = vadd.s32 3, %v289_v28 }
 0x100   :  { %v317_v53 = vmin.u32 %v266_v51, %v264_v48  ;;  %v158_v54 = vshrl.u32 %v157_v52, 30  ;;  %v294_v40 = vand.u32 3, %v293_v37 }
 0x102   :  { %v268_v55 = vclz %v317_v53  ;;  %v159_v56 = vshll.u32 %v158_v54, 30  ;;  %v182_v36 = vsub.s32 4, %v158_v54  ;;  %vm299_vm3 = vcmp.eq.s32.totalorder %v294_v40, 2 }
 0x103   :  { %vm296_vm4 = vcmp.eq.s32.totalorder %v294_v40, 0  ;;  %vm295_vm5 = vcmp.lt.s32.totalorder %v294_v40, 2 }
 0x104   :  { %v318_v57 = vadd.s32 4294967294, %v268_v55  ;;  %v160_v58 = vsub.s32 %v156_v50, %v159_v56  ;;  %v183_v39 = vsel %vm98_vm1, %v182_v36, %v158_v54 }
 0x105   :  { %v185_v43 = vsel %vm97_vm2, 0, %v183_v39 }
 0x106   :  { %vm319_vm13 = vcmp.lt.s32.totalorder %v318_v57, 0  ;;  %v162_v60 = vsub.s32 0, %v160_v58  ;;  %v189_v27 = vadd.s32 3, %v185_v43 }
 0x107   :  { %v271_v59 = vsel %vm319_vm13, 0, %v318_v57 }
 0x108   :  { %v272_v62 = vsub.s32 32, %v271_v59  ;;  %v276_v63 = vsub.s32 4294967266, %v271_v59  ;;  %v313_v0 = vmin.u32 %v162_v60, %v160_v58  ;;  %v273_v1 = vshll.u32 %v264_v48, %v271_v59 }
 0x109   :  { %v190_v50 = vand.u32 3, %v189_v27 }
 0x10a   :  { %v274_v2 = vshrl.u32 %v256_v61, %v272_v62  ;;  %v277_v8 = vadd.s32 127, %v276_v63  ;;  %v164_v9 = vclz %v313_v0 }
 0x10b   :  { %vm195_vm7 = vcmp.eq.s32.totalorder %v190_v50, 2  ;;  %vm192_vm8 = vcmp.eq.s32.totalorder %v190_v50, 0  ;;  %vm191_vm9 = vcmp.lt.s32.totalorder %v190_v50, 2 }
 0x10c   :  { %v275_v11 = vor.u32 %v274_v2, %v273_v1  ;;  %v278_v12 = vshll.u32 %v277_v8, 23  ;;  %v314_v13 = vadd.s32 4294967294, %v164_v9 }
 0x10e   :  { %v279_v14 = vor.u32 4788187, %v278_v12  ;;  %vm315_vm14 = vcmp.lt.s32.totalorder %v314_v13, 0  ;;  %v282_v16 = vcvt.s32.f32 %v275_v11 }
 0x10f   :  { %v167_v17 = vsel %vm315_vm14, 0, %v314_v13 }
 0x110   :  { %v280_v15 = vand.u32 2147483647, %v279_v14  ;;  %v168_v19 = vsub.s32 32, %v167_v17  ;;  %v172_v20 = vsub.s32 4294967266, %v167_v17  ;;  %v169_v21 = vshll.u32 %v160_v58, %v167_v17 }
 0x112   :  { %v283_v5 = vmul.f32 %v282_v16, %v280_v15  ;;  %v170_v24 = vshrl.u32 %v152_v18, %v168_v19  ;;  %v173_v26 = vadd.s32 127, %v172_v20 }
 0x114   :  { %v284_v29 = vxor.u32 2147483648, %v283_v5  ;;  %v171_v30 = vor.u32 %v170_v24, %v169_v21  ;;  %v174_v23 = vshll.u32 %v173_v26, 23 }
 0x116   :  { %v285_v31 = vsel %vm202_vm15, %v284_v29, %v283_v5  ;;  %v175_v32 = vor.u32 4788187, %v174_v23  ;;  %v178_v34 = vcvt.s32.f32 %v171_v30 }
 0x117   :  { %v288_v25 = vsel %vm201_vm0, %v380_v3, %v285_v31 }
 0x118   :  { %342 = vcosq.f32 %v288_v25  ;;  %v176_v33 = vand.u32 2147483647, %v175_v32 }
 0x119   :  { %344 = vsinq.f32 %v288_v25 }
 0x11a   :  { %v179_v35 = vmul.f32 %v178_v34, %v176_v33 }
 0x11c   :  { %v180_v38 = vxor.u32 2147483648, %v179_v35 }
 0x11e   :  { %v181_v4 = vsel %vm98_vm1, %v180_v38, %v179_v35 }
 0x11f   :  { %v184_v41 = vsel %vm97_vm2, %v384_v6, %v181_v4 }
 0x120   :  { %346 = vcosq.f32 %v184_v41 }
 0x121   :  { %348 = vsinq.f32 %v184_v41 }
 0x122   :  { %v343_v42 = vpop.eup %342 }
 0x123   :  { %v345_v44 = vpop.eup %344  ;;  %v300_v45 = vxor.u32 2147483648, %v343_v42 }
 0x124   :  { %v297_v46 = vxor.u32 2147483648, %v345_v44 }
 0x125   :  { %v301_v47 = vsel %vm299_vm3, %v300_v45, %v345_v44 }
 0x126   :  { %v298_v48 = vsel %vm296_vm4, %v343_v42, %v297_v46 }
 0x127   :  { %v302_v10 = vsel %vm295_vm5, %v298_v48, %v301_v47 }
 0x128   :  { %v303_v49 = vsel %vm292_vm6, nan, %v302_v10 }
 0x129   :  { %305 = vst [vmem:[%s450_s2 + $0x8] sm:$0xff] %v303_v49 }
 0x12a   :  { %v347_v51 = vpop.eup %346 }
 0x12b   :  { %v349_v52 = vpop.eup %348  ;;  %v196_v53 = vxor.u32 2147483648, %v347_v51 }
 0x12c   :  { %v193_v54 = vxor.u32 2147483648, %v349_v52 }
 0x12d   :  { %v197_v55 = vsel %vm195_vm7, %v196_v53, %v349_v52 }
 0x12e   :  { %v194_v56 = vsel %vm192_vm8, %v347_v51, %v193_v54 }
 0x12f   :  { %v198_v57 = vsel %vm191_vm9, %v194_v56, %v197_v55 }
 0x130   :  { %v199_v3 = vsel %vm188_vm10, nan, %v198_v57 }
 0x131   :  { %304 = vst [vmem:[%s450_s2] sm:$0xff] %v199_v3 }

</bundles_post_ra>
